<compile_context>
chip_gen: v6e
topology: v6e:2x2x1
jax: 0.10.0
libtpu: 0.0.40
codegen_flags: <defaults>
</compile_context>

<pallas_src>
import jax
import jax.numpy as jnp
from jax import lax
from jax.experimental import pallas as pl
from jax.experimental.pallas import tpu as pltpu


def _round_up(n, m):
    return ((n + m - 1) // m) * m


def _make_kernel(hidden):
    def kernel(x_ref, w1_ref, b1_ref, wf_ref, bo_ref, out_ref):
        x = x_ref[...]                                               # [TB, 4] f32
        pre_w = w1_ref.shape[1]                                      # PRE (>= 128)

        # Pre-activation: lanes [0, hidden) = x @ W1 + b1 (hidden layer); lanes
        # [hidden, hidden+discr) get the one-hot of the discrete index. ReLU is the
        # identity on {0,1}, so the one-hot survives the activation unchanged.
        pre = jnp.dot(x, w1_ref[...], preferred_element_type=jnp.float32) + b1_ref[...]
        idx = x[:, 2:3].astype(jnp.int32)                            # trunc, like torch .long()
        lane = lax.broadcasted_iota(jnp.int32, (x.shape[0], pre_w), 1)
        pre = pre + (lane == (idx + hidden)).astype(jnp.float32)

        h = jnp.maximum(pre, 0.0)                                    # [TB, PRE]

        # Single fused tail matmul: rows [0,hidden) of wf = W2@Wo, rows
        # [hidden, hidden+discr) = Emb@Wo, remaining rows zero.
        out = jnp.dot(h, wf_ref[...], preferred_element_type=jnp.float32) + bo_ref[...]
        out_ref[...] = out.astype(out_ref.dtype)

    return kernel


def fuse_params(params, out_size):
    """Precompute fused / padded weights once per parameter update (exact math)."""
    w1, b1, w2, b2, emb, wo, bo = params
    hidden = w1.shape[1]
    discr = emb.shape[0]
    pre_w = max(128, _round_up(hidden + discr, 128))

    # conti_x_a = [x0, x1, x3]: zero row at the discrete column (2); w1's action row
    # (index 2 of the [3,hidden] weight) moves to input row 3. Output lanes padded to PRE.
    w1p = jnp.zeros((4, pre_w), jnp.float32)
    w1p = w1p.at[0:2, :hidden].set(w1[0:2, :])
    w1p = w1p.at[3, :hidden].set(w1[2, :])
    b1p = jnp.zeros((1, pre_w), jnp.float32).at[:, :hidden].set(b1)

    # Tail fusion: ((h @ w2 + b2) + emb[idx]) @ wo + bo
    #            = relu(pre)[:, :hidden] @ (w2@wo) + onehot @ (emb@wo) + (b2@wo + bo)
    wf = jnp.zeros((pre_w, out_size), jnp.float32)
    wf = wf.at[:hidden, :].set(w2 @ wo)
    wf = wf.at[hidden:hidden + discr, :].set(emb @ wo)
    bof = (b2 @ wo + bo).reshape(1, out_size)

    return w1p, b1p, wf, bof, hidden


def critic_net_forward(x, fused, block_b=None):
    w1p, b1p, wf, bof, hidden = fused
    B = x.shape[0]
    out_size = wf.shape[1]
    pre_w = w1p.shape[1]

    x = x[:, :4].astype(jnp.float32)                                 # kernel uses columns 0..3

    if block_b is None:
        if B <= 8:
            block_b = B
        else:
            # >= 2 grid programs when possible (both v7x TensorCores); cap at 2048 rows so
            # double-buffered [TB, PRE] tiles stay inside v5e's scoped VMEM budget.
            block_b = min(_round_up(pl.cdiv(B, 2), 8), 2048)
    if block_b != B:
        block_b = _round_up(block_b, 8)                              # (8,128) sublane constraint
    grid = (pl.cdiv(B, block_b),)

    def pinned(shape):
        return pl.BlockSpec(shape, lambda i: (0, 0))

    flops = 2 * B * (4 * pre_w + pre_w * out_size)
    bytes_accessed = 4 * (B * 4 + w1p.size + b1p.size + wf.size + bof.size + B * out_size)

    return pl.pallas_call(
        _make_kernel(hidden),
        out_shape=jax.ShapeDtypeStruct((B, out_size), jnp.float32),
        grid=grid,
        in_specs=[
            pl.BlockSpec((block_b, 4), lambda i: (i, 0)),            # x tiles over batch
            pinned(w1p.shape),                                       # [4, PRE]
            pinned(b1p.shape),                                       # [1, PRE]
            pinned(wf.shape),                                        # [PRE, out_size]
            pinned(bof.shape),                                       # [1, out_size]
        ],
        out_specs=pl.BlockSpec((block_b, out_size), lambda i: (i, 0)),
        compiler_params=pltpu.CompilerParams(
            dimension_semantics=("parallel",),
            vmem_limit_bytes=32 * 1024 * 1024),
        cost_estimate=pl.CostEstimate(
            flops=flops, transcendentals=0, bytes_accessed=bytes_accessed),
    )(x, w1p, b1p, wf, bof)


def init_params(key, state_size=3, out_size=2, discr_size=5,
                hidden=64, hidde_size_out=8):
    ks = jax.random.split(key, 4)
    in_dim = state_size - 1 + 1  # drop discrete column, add action column -> 3

    def lin(k, fan_in, fan_out):
        bound = 1.0 / jnp.sqrt(jnp.float32(fan_in))
        kw, kb = jax.random.split(k)
        w = jax.random.uniform(kw, (fan_in, fan_out), jnp.float32, -bound, bound)
        b = jax.random.uniform(kb, (1, fan_out), jnp.float32, -bound, bound)
        return w, b

    w1, b1 = lin(ks[0], in_dim, hidden)
    w2, b2 = lin(ks[1], hidden, hidde_size_out)
    emb = jax.random.normal(ks[2], (discr_size, hidde_size_out), jnp.float32)
    wo, bo = lin(ks[3], hidde_size_out, out_size)
    return (w1, b1, w2, b2, emb, wo, bo)


def reference_forward(x, params):
    """Pure-JAX reference matching the PyTorch module (unfused math)."""
    w1, b1, w2, b2, emb, wo, bo = params
    conti_x_a = jnp.concatenate([x[:, 0:2], x[:, 3:4]], axis=1)
    h = jnp.maximum(conti_x_a @ w1 + b1, 0.0) @ w2 + b2
    e = emb[x[:, 2].astype(jnp.int32)]
    return (h + e) @ wo + bo


if __name__ == "__main__":
    key = jax.random.PRNGKey(0)
    k_x, k_p, k_d = jax.random.split(key, 3)

    B, state_size, out_size, discr_size = 8, 3, 2, 5
    params = init_params(k_p, state_size=state_size, out_size=out_size,
                         discr_size=discr_size)
    fused = fuse_params(params, out_size)   # hoisted: computed once per parameter update

    # x columns: [conti0, conti1, discrete index (as float), action]
    conti = jax.random.normal(k_x, (B, 2), jnp.float32)
    discr = jax.random.randint(k_d, (B, 1), 0, discr_size).astype(jnp.float32)
    action = jax.random.normal(jax.random.fold_in(k_x, 1), (B, 1), jnp.float32)
    x = jnp.concatenate([conti, discr, action], axis=1)  # [B, 4]

    out = critic_net_forward(x, fused)
    out = jax.block_until_ready(out)

    ref = reference_forward(x, params)
    assert out.shape == (B, out_size)
    assert jnp.allclose(out, ref, atol=1e-4, rtol=1e-4)
    print("KERNEL_OK")
</pallas_src>

<mosaic_0001>
module attributes {stable_mosaic.version = 11 : i64} {
  func.func @kernel(%arg0: i32, %arg1: memref<8x4xf32, #tpu.memory_space<vmem>>, %arg2: memref<4x128xf32, #tpu.memory_space<vmem>>, %arg3: memref<1x128xf32, #tpu.memory_space<vmem>>, %arg4: memref<128x2xf32, #tpu.memory_space<vmem>>, %arg5: memref<1x2xf32, #tpu.memory_space<vmem>>, %arg6: memref<8x2xf32, #tpu.memory_space<vmem>>) attributes {dimension_semantics = [#tpu.dimension_semantics<parallel>], iteration_bounds = array<i64: 1>, scalar_prefetch = 0 : i64, scratch_operands = 0 : i64, tpu.core_type = #tpu.core_type<tc>, window_params = [{transform_indices = @transform_0, window_bounds = array<i64: 8, 4>}, {pipeline_mode = #tpu.pipeline_mode<synchronous>, transform_indices = @transform_1, window_bounds = array<i64: 4, 128>}, {pipeline_mode = #tpu.pipeline_mode<synchronous>, transform_indices = @transform_2, window_bounds = array<i64: 1, 128>}, {pipeline_mode = #tpu.pipeline_mode<synchronous>, transform_indices = @transform_3, window_bounds = array<i64: 128, 2>}, {pipeline_mode = #tpu.pipeline_mode<synchronous>, transform_indices = @transform_4, window_bounds = array<i64: 1, 2>}, {transform_indices = @transform_5, window_bounds = array<i64: 8, 2>}]} {
    %c0 = arith.constant 0 : index
    %c0_0 = arith.constant 0 : index
    %0 = vector.load %arg1[%c0, %c0_0] : memref<8x4xf32, #tpu.memory_space<vmem>>, vector<8x4xf32>
    %c0_1 = arith.constant 0 : index
    %c0_2 = arith.constant 0 : index
    %1 = vector.load %arg2[%c0_1, %c0_2] : memref<4x128xf32, #tpu.memory_space<vmem>>, vector<4x128xf32>
    %cst = arith.constant dense<0.000000e+00> : vector<8x128xf32>
    %2 = tpu.matmul %0, %1, %cst {dimension_numbers = #tpu.dot_dimension_numbers<[1], [0], [0], [1], [0, 0, 1, 1], [], []>} : vector<8x4xf32>, vector<4x128xf32>, vector<8x128xf32> -> vector<8x128xf32>
    %c0_3 = arith.constant 0 : index
    %c0_4 = arith.constant 0 : index
    %3 = vector.load %arg3[%c0_3, %c0_4] : memref<1x128xf32, #tpu.memory_space<vmem>>, vector<1x128xf32>
    %4 = vector.broadcast %3 : vector<1x128xf32> to vector<8x128xf32>
    %5 = arith.addf %2, %4 : vector<8x128xf32>
    %6 = vector.extract_strided_slice %0 {offsets = [0, 2], sizes = [8, 1], strides = [1, 1]} : vector<8x4xf32> to vector<8x1xf32>
    %7 = arith.fptosi %6 : vector<8x1xf32> to vector<8x1xi32>
    %8 = tpu.iota {dimensions = array<i32: 1>} : vector<8x128xi32>
    %c64_i32 = arith.constant 64 : i32
    %9 = vector.broadcast %c64_i32 : i32 to vector<8x1xi32>
    %10 = arith.addi %7, %9 : vector<8x1xi32>
    %11 = vector.broadcast %10 : vector<8x1xi32> to vector<8x128xi32>
    %12 = arith.cmpi eq, %8, %11 : vector<8x128xi32>
    %13 = arith.extui %12 : vector<8x128xi1> to vector<8x128xi32>
    %14 = arith.sitofp %13 : vector<8x128xi32> to vector<8x128xf32>
    %15 = arith.addf %5, %14 : vector<8x128xf32>
    %cst_5 = arith.constant 0.000000e+00 : f32
    %16 = vector.broadcast %cst_5 : f32 to vector<8x128xf32>
    %17 = arith.maximumf %15, %16 : vector<8x128xf32>
    %c0_6 = arith.constant 0 : index
    %c0_7 = arith.constant 0 : index
    %18 = vector.load %arg4[%c0_6, %c0_7] : memref<128x2xf32, #tpu.memory_space<vmem>>, vector<128x2xf32>
    %cst_8 = arith.constant dense<0.000000e+00> : vector<8x2xf32>
    %19 = tpu.matmul %17, %18, %cst_8 {dimension_numbers = #tpu.dot_dimension_numbers<[1], [0], [0], [1], [0, 0, 1, 1], [], []>} : vector<8x128xf32>, vector<128x2xf32>, vector<8x2xf32> -> vector<8x2xf32>
    %c0_9 = arith.constant 0 : index
    %c0_10 = arith.constant 0 : index
    %20 = vector.load %arg5[%c0_9, %c0_10] : memref<1x2xf32, #tpu.memory_space<vmem>>, vector<1x2xf32>
    %21 = vector.broadcast %20 : vector<1x2xf32> to vector<8x2xf32>
    %22 = arith.addf %19, %21 : vector<8x2xf32>
    %c0_11 = arith.constant 0 : index
    %c0_12 = arith.constant 0 : index
    %23 = vector.load %arg6[%c0_11, %c0_12] : memref<8x2xf32, #tpu.memory_space<vmem>>, vector<8x2xf32>
    tpu.vector_store %arg6[%c0_11, %c0_12], %22 {strides = array<i32>} : memref<8x2xf32, #tpu.memory_space<vmem>>, vector<8x2xf32>,
    return
  }
  func.func @transform_0(%arg0: i32) -> (i32, i32) {
    %c0_i32 = arith.constant 0 : i32
    %c0_i32_0 = arith.constant 0 : i32
    return %arg0, %c0_i32 : i32, i32
  }
  func.func @transform_1(%arg0: i32) -> (i32, i32) {
    %c0_i32 = arith.constant 0 : i32
    %c0_i32_0 = arith.constant 0 : i32
    %c0_i32_1 = arith.constant 0 : i32
    return %c0_i32, %c0_i32_0 : i32, i32
  }
  func.func @transform_2(%arg0: i32) -> (i32, i32) {
    %c0_i32 = arith.constant 0 : i32
    %c0_i32_0 = arith.constant 0 : i32
    %c0_i32_1 = arith.constant 0 : i32
    return %c0_i32, %c0_i32_0 : i32, i32
  }
  func.func @transform_3(%arg0: i32) -> (i32, i32) {
    %c0_i32 = arith.constant 0 : i32
    %c0_i32_0 = arith.constant 0 : i32
    %c0_i32_1 = arith.constant 0 : i32
    return %c0_i32, %c0_i32_0 : i32, i32
  }
  func.func @transform_4(%arg0: i32) -> (i32, i32) {
    %c0_i32 = arith.constant 0 : i32
    %c0_i32_0 = arith.constant 0 : i32
    %c0_i32_1 = arith.constant 0 : i32
    return %c0_i32, %c0_i32_0 : i32, i32
  }
  func.func @transform_5(%arg0: i32) -> (i32, i32) {
    %c0_i32 = arith.constant 0 : i32
    %c0_i32_0 = arith.constant 0 : i32
    return %arg0, %c0_i32 : i32, i32
  }
}

</mosaic_0001>

<bundles_post_ra>
// kernel: tpu_custom_call.1
= control target key start
LH: loop header
LB: loop body
LE: loop exit
PB: predicated region body
PF: predicated region fallthrough
CT: control target
= control target key end

     0   :  { %vm33_vm0 = vcmask 1043456   ;;  %vm29_vm1 = vcmask 31744   ;;  %v288_v0 = vmov 0.0   ;;  %vm289_vm2 = vmmov 0   ;;  %s404_s1 = inlined_call_operand.vmem [shape: f32[4,128], index: 1, kind: input, shape index: {}]   ;;  %s405_s0 = inlined_call_operand.vmem [shape: f32[8,4], index: 0, kind: input, shape index: {}]   ;;  %s406_s3 = inlined_call_operand.vmem [shape: f32[128,2], index: 3, kind: input, shape index: {}]   ;;  %s407_s2 = inlined_call_operand.vmem [shape: f32[1,128], index: 2, kind: input, shape index: {}]   ;;  %s408_s4 = inlined_call_operand.vmem [shape: f32[1,2], index: 4, kind: input, shape index: {}]   ;;  %s409_s5 = inlined_call_operand.vmem [shape: f32[8,2], index: 5, kind: output, shape index: {}]  }
   0x1   :  { %242 = vmatprep.subr.mxu0 %v288_v0  ;;  %v21_v1 = vld [vmem:[%s404_s1] sm:$0xf]  ;;  %244 = vmatprep.mubr.msk.f32.mxu0 %vm289_vm2, %v288_v0  ;;  %v134_v3 = vld [vmem:[%s406_s3 + $0x78] sm:$0xff]  ;;  %v290_v4 = vmov 2   ;;  %v133_v6 = vld [vmem:[%s406_s3 + $0x70] sm:$0xff]  ;;  %v108_v23 = vlaneseq  ;;  %vm212_vm4 = vcmask 15360  }
   0x2   :  { %v20_v2 = vld [vmem:[%s405_s0] sm:$0xff]  ;;  %243 = vmatpush3.msk.msra.mxu0 %vm33_vm0, %v21_v1  ;;  %287 = vset.pattern.permute.xlu0 %v290_v4  ;;  %v132_v8 = vld [vmem:[%s406_s3 + $0x68] sm:$0xff]  ;;  %v130_v11 = vld [vmem:[%s406_s3 + $0x58] sm:$0xff] }
   0x3   :  { %v282_v5 = vtrunc.f32 %v20_v2  ;;  %245 = vmatmul.mubr.msk.f32.vlgmr.msra.gmra.mxu0 %vm29_vm1, %v20_v2  ;;  %247 = vmatprep.subr.mxu1 %v288_v0  ;;  %v131_v10 = vld [vmem:[%s406_s3 + $0x60] sm:$0xff]  ;;  %v129_v12 = vld [vmem:[%s406_s3 + $0x50] sm:$0xff]  ;;  %v128_v13 = vld [vmem:[%s406_s3 + $0x48] sm:$0xff]  ;;  %v109_v24 = vand.u32 127, %v108_v23 }
   0x4   :  { %248 = vmatpush3.msra.mxu1 %v134_v3  ;;  %279 = vmatprep.mubr.msk.f32.mxu1 %vm289_vm2, %v288_v0  ;;  %v127_v14 = vld [vmem:[%s406_s3 + $0x40] sm:$0xff]  ;;  %v126_v15 = vld [vmem:[%s406_s3 + $0x38] sm:$0xff]  ;;  %v125_v16 = vld [vmem:[%s406_s3 + $0x30] sm:$0xff] }
   0x5   :  { %v283_v7 = vcvt.f32.s32 %v282_v5  ;;  %249 = vmatprep.subr.mxu1 %v288_v0  ;;  %v124_v17 = vld [vmem:[%s406_s3 + $0x28] sm:$0xff]  ;;  %v123_v18 = vld [vmem:[%s406_s3 + $0x20] sm:$0xff]  ;;  %v122_v19 = vld [vmem:[%s406_s3 + $0x18] sm:$0xff] }
   0x6   :  { %250 = vmatpush3.msra.mxu1 %v133_v6  ;;  %v121_v20 = vld [vmem:[%s406_s3 + $0x10] sm:$0xff]  ;;  %v120_v21 = vld [vmem:[%s406_s3 + $0x8] sm:$0xff]  ;;  %v119_v22 = vld [vmem:[%s406_s3] sm:$0xff] }
   0x7   :  { %v110_v9 = vadd.s32 64, %v283_v7  ;;  %251 = vmatprep.subr.mxu1 %v288_v0  ;;  %v218_v26 = vld [vmem:[%s407_s2] ss:$0 sm:$0xff] }
   0x8   :  { %252 = vmatpush3.msra.mxu1 %v132_v8  ;;  %v222_v33 = vld [vmem:[%s408_s4] ss:$0 sm:$0xff] }
   0x9   :  { %112 = vperm.xlu0 %287, %v110_v9   ;;  %253 = vmatprep.subr.mxu1 %v288_v0 }
   0xa   :  { %254 = vmatpush3.msra.mxu1 %v131_v10 }
   0xb   :  { %255 = vmatprep.subr.mxu1 %v288_v0 }
   0xc   :  { %256 = vmatpush3.msra.mxu1 %v130_v11 }
   0xd   :  { %257 = vmatprep.subr.mxu1 %v288_v0 }
   0xe   :  { %258 = vmatpush3.msra.mxu1 %v129_v12 }
   0xf   :  { %259 = vmatprep.subr.mxu1 %v288_v0 }
  0x10   :  { %260 = vmatpush3.msra.mxu1 %v128_v13 }
  0x11   :  { %261 = vmatprep.subr.mxu1 %v288_v0 }
  0x12   :  { %262 = vmatpush3.msra.mxu1 %v127_v14 }
  0x13   :  { %263 = vmatprep.subr.mxu1 %v288_v0 }
  0x14   :  { %264 = vmatpush3.msra.mxu1 %v126_v15 }
  0x15   :  { %265 = vmatprep.subr.mxu1 %v288_v0 }
  0x16   :  { %266 = vmatpush3.msra.mxu1 %v125_v16 }
  0x17   :  { %267 = vmatprep.subr.mxu1 %v288_v0 }
  0x18   :  { %268 = vmatpush3.msra.mxu1 %v124_v17 }
  0x19   :  { %269 = vmatprep.subr.mxu1 %v288_v0 }
  0x1a   :  { %270 = vmatpush3.msra.mxu1 %v123_v18 }
  0x1b   :  { %271 = vmatprep.subr.mxu1 %v288_v0 }
  0x1c   :  { %272 = vmatpush3.msra.mxu1 %v122_v19 }
  0x1d   :  { %273 = vmatprep.subr.mxu1 %v288_v0 }
  0x1e   :  { %274 = vmatpush3.msra.mxu1 %v121_v20 }
  0x1f   :  { %275 = vmatprep.subr.mxu1 %v288_v0 }
  0x20   :  { %276 = vmatpush3.msra.mxu1 %v120_v21 }
  0x21   :  { %277 = vmatprep.subr.mxu1 %v288_v0 }
  0x22   :  { %278 = vmatpush3.msra.mxu1 %v119_v22 }
  0x84   :  { %v113_v25 = vpop.permute.xlu0 %112 }
  0x85   :  { %vm114_vm3 = vcmp.eq.s32.totalorder %v109_v24, %v113_v25 }
  0x86   :  { %v221_v27 = vsel %vm114_vm3, 1.0, %v288_v0 }
  0xc3   :  { %v103_v28 = vpop.f32.mrf.mxu0 }
  0xc4   :  { %v104_v29 = vadd.f32 %v218_v26, %v103_v28 }
  0xc5   :  { %v246_v30 = vpop.f32.mrf.mxu0 }
  0xc6   :  { %v117_v31 = vadd.f32 %v221_v27, %v104_v29 }
  0xc8   :  { %v118_v32 = vmax.f32 %v117_v31, 0.0 }
  0xca   :  { %280 = vmatmul.mubr.f32.vlgmr.msra.gmra.mxu1 %v118_v32 }
 0x18a   :  { %v208_v34 = vpop.f32.mrf.mxu1 }
 0x18b   :  { %v209_v35 = vadd.f32 %v222_v33, %v208_v34 }
 0x18c   :  { %v281_v36 = vpop.f32.mrf.mxu1 }
 0x18d   :  { %213 = vst.msk [vmem:[%s409_s5] sm:$0xff] %vm212_vm4, %v209_v35 }

</bundles_post_ra>
